<compile_context>
chip_gen: v7x
topology: tpu7x:2x2x1
jax: 0.10.0
libtpu: 0.0.40
codegen_flags: <defaults>
</compile_context>

<pallas_src>
import math

import jax
import jax.numpy as jnp
from jax.experimental import pallas as pl
from jax.experimental.pallas import tpu as pltpu


def _convt_bn_silu_kernel(x_ref, w_ref, b_ref, o_ref):
    # x_ref: (tr*Wp, C1)   bf16 pixels (rows) x input channels
    # w_ref: (C1, K*C2p)   bf16 weights for this kh tap, BN scale folded in,
    #                      columns ordered (kw, c2)
    # b_ref: (1, K*C2p)    f32 folded BN bias per column
    # o_ref: (tr, Wp, K*C2p)
    y = jnp.dot(x_ref[...], w_ref[...], preferred_element_type=jnp.float32)
    y = y + b_ref[...]
    # SiLU = y * sigmoid(y); exp + reciprocal both land on the EUP slot.
    y = y * pl.reciprocal(1.0 + jnp.exp(-y), approx=True)
    o_ref[...] = y.reshape(o_ref.shape).astype(o_ref.dtype)


def _vmem_budget():
    """(tile_budget_bytes, vmem_limit_bytes), generation-aware with v7x-safe fallback."""
    try:
        cap = pltpu.get_tpu_info().vmem_capacity_bytes
    except Exception:
        cap = 64 * 1024 * 1024  # conservative: v7x has 64 MiB per TensorCore
    vmem_limit = min(int(cap * 3 // 4), cap - (8 << 20))
    tile_budget = int(cap // 2)
    return tile_budget, vmem_limit


def _pick_tile_rows(R, Wp, C1, KC2p, in_bytes, out_bytes, tile_budget):
    """Largest image-row tile that fits the VMEM budget (double-buffered in/out)."""
    c1_lanes = pl.cdiv(C1, 128) * 128            # VMEM footprint is lane-padded
    per_row = Wp * (c1_lanes * in_bytes + KC2p * out_bytes)
    w_buf = 2 * C1 * KC2p * in_bytes             # double-buffered weight tap
    budget = max(tile_budget - w_buf - (1 << 20), 2 * per_row)
    tr = max(1, budget // (2 * per_row))
    tr = min(tr, max(1, pl.cdiv(R, 2)))          # keep >=2 grid steps (v7x megacore)
    return int(tr)


def conv_transpose_bn_silu(x, weight, gamma, beta, run_mean, run_var, eps=1e-5, *,
                           data_format="NCHW", compute_dtype=jnp.bfloat16,
                           out_dtype=jnp.float32, tile_rows=None):
    """Fused ConvTranspose2d(k=s, p=0, bias=False) + BatchNorm2d(eval) + SiLU.

    x: (N, C1, H, W) if data_format=="NCHW" else (N, H, W, C1).
    weight: (C1, C2, K, K)  (PyTorch ConvTranspose2d layout).
    Returns (N, C2, K*H, K*W) (or NHWC if data_format=="NHWC").
    """
    if data_format == "NCHW":
        N, C1, H, W = x.shape
        x_nhwc = jnp.transpose(x, (0, 2, 3, 1))
    else:
        N, H, W, C1 = x.shape
        x_nhwc = x
    C1w, C2, K, Kw = weight.shape
    assert C1w == C1 and K == Kw, "square kernel expected"
    # Specializes the module defaults: stride == k, padding == 0 (non-overlapping taps).
    # TODO(synk): general overlapping case (k != s) not implemented.
    # TODO(synk): training-mode BatchNorm (batch statistics) not implemented; uses running stats.

    # Lane-dense per-tap output width: K*C2p must be a multiple of 128.
    lane_quant = 128 // math.gcd(K, 128)
    C2p = pl.cdiv(C2, lane_quant) * lane_quant
    KC2p = K * C2p
    Wp = pl.cdiv(W, 8) * 8                       # sublane-align width (free in-kernel reshape)
    R = N * H

    in_bytes = jnp.dtype(compute_dtype).itemsize
    out_bytes = jnp.dtype(out_dtype).itemsize
    tile_budget, vmem_limit = _vmem_budget()
    tr = tile_rows if tile_rows is not None else _pick_tile_rows(
        R, Wp, C1, KC2p, in_bytes, out_bytes, tile_budget)
    tr = max(1, min(int(tr), R))
    Rp = pl.cdiv(R, tr) * tr                     # pad rows to a tile multiple (no assert)

    # Fold BatchNorm (inference / running stats): scale goes into the weights,
    # only the bias survives into the kernel epilogue.
    scale_c = gamma / jnp.sqrt(run_var + eps)                      # (C2,)
    bias_c = beta - run_mean * scale_c                             # (C2,)
    scale_p = jnp.zeros((C2p,), jnp.float32).at[:C2].set(scale_c.astype(jnp.float32))
    bias_p = jnp.zeros((C2p,), jnp.float32).at[:C2].set(bias_c.astype(jnp.float32))

    # Weights (C1, C2, kh, kw) -> (kh, C1, kw*C2p), BN scale folded, bf16.
    w_r = jnp.transpose(weight, (2, 0, 3, 1))                      # (K, C1, K, C2)
    w_r = jnp.pad(w_r, ((0, 0), (0, 0), (0, 0), (0, C2p - C2)))
    w_r = w_r * scale_p[None, None, None, :]
    w_flat = w_r.reshape(K, C1, KC2p).astype(compute_dtype)
    bias_flat = jnp.tile(bias_p, (K,)).reshape(1, KC2p)            # column order (kw, c2)

    # Input pixels: (N*H, W, C1) -> pad to (Rp, Wp, C1) -> flatten to 2D, bf16.
    x_rows = x_nhwc.reshape(R, W, C1)
    if Rp != R or Wp != W:
        x_rows = jnp.pad(x_rows, ((0, Rp - R), (0, Wp - W), (0, 0)))
    x2d = x_rows.reshape(Rp * Wp, C1).astype(compute_dtype)

    grid = (Rp // tr, K)   # kh innermost: the X tile stays VMEM-resident across the K taps

    out = pl.pallas_call(
        _convt_bn_silu_kernel,
        out_shape=jax.ShapeDtypeStruct((Rp, K, Wp, KC2p), out_dtype),
        grid=grid,
        in_specs=[
            pl.BlockSpec((tr * Wp, C1), lambda i, kh: (i, 0)),
            pl.BlockSpec((None, C1, KC2p), lambda i, kh: (kh, 0, 0)),
            pl.BlockSpec((1, KC2p), lambda i, kh: (0, 0)),
        ],
        out_specs=pl.BlockSpec((tr, None, Wp, KC2p), lambda i, kh: (i, kh, 0, 0)),
        compiler_params=pltpu.CompilerParams(
            dimension_semantics=("parallel", "arbitrary"),
            vmem_limit_bytes=vmem_limit),
    )(x2d, w_flat, bias_flat)

    # (Rp, K, Wp, K*C2p): drop padding, then pure reshapes give NHWC (no transpose).
    out = out[:R, :, :W, :].reshape(N, H, K, W, K, C2p)[..., :C2]
    out = out.reshape(N, K * H, K * W, C2)                         # NHWC (N, 2H, 2W, C2)
    if data_format == "NCHW":
        out = jnp.transpose(out, (0, 3, 1, 2))                     # only remaining layout cost
    return out


def _reference(x, w, gamma, beta, mean, var, eps=1e-5):
    """Pure-JAX f32 reference for ConvTranspose2d(k=s, p=0) + BN(eval) + SiLU (NCHW)."""
    N, C1, H, W = x.shape
    _, C2, K, _ = w.shape
    y = jnp.einsum("nchw,cdkl->ndhkwl", x, w).reshape(N, C2, K * H, K * W)
    s = gamma / jnp.sqrt(var + eps)
    y = y * s[None, :, None, None] + (beta - mean * s)[None, :, None, None]
    return y * jax.nn.sigmoid(y)


if __name__ == "__main__":
    key = jax.random.PRNGKey(0)
    k_x, k_w, k_g, k_b, k_m, k_v = jax.random.split(key, 6)

    N, C1, H, W = 2, 4, 16, 16
    C2, K = 8, 2

    x = jax.random.normal(k_x, (N, C1, H, W), dtype=jnp.float32)
    # ConvTranspose2d weight shape: (in_channels, out_channels, kH, kW), bias=False (bn=True)
    weight = jax.random.normal(k_w, (C1, C2, K, K), dtype=jnp.float32) * 0.1
    # BatchNorm2d params / running stats (inference-mode BN)
    gamma = jax.random.uniform(k_g, (C2,), minval=0.5, maxval=1.5, dtype=jnp.float32)
    beta = jax.random.normal(k_b, (C2,), dtype=jnp.float32) * 0.1
    run_mean = jax.random.normal(k_m, (C2,), dtype=jnp.float32) * 0.1
    run_var = jax.random.uniform(k_v, (C2,), minval=0.5, maxval=1.5, dtype=jnp.float32)

    run = jax.jit(conv_transpose_bn_silu)
    out = run(x, weight, gamma, beta, run_mean, run_var)
    jax.block_until_ready(out)
    assert out.shape == (N, C2, 2 * H, 2 * W), out.shape

    ref = _reference(x, weight, gamma, beta, run_mean, run_var)
    err = float(jnp.max(jnp.abs(out - ref)))
    assert err < 5e-2, f"max abs error {err}"

    print("KERNEL_OK")
</pallas_src>

<mosaic_0001>
module attributes {stable_mosaic.version = 11 : i64} {
  func.func @_convt_bn_silu_kernel(%arg0: i32, %arg1: i32, %arg2: memref<256x4xbf16, #tpu.memory_space<vmem>>, %arg3: memref<1x4x128xbf16, #tpu.memory_space<vmem>>, %arg4: memref<1x128xf32, #tpu.memory_space<vmem>>, %arg5: memref<16x1x16x128xf32, #tpu.memory_space<vmem>>) attributes {dimension_semantics = [#tpu.dimension_semantics<parallel>, #tpu.dimension_semantics<arbitrary>], iteration_bounds = array<i64: 2, 2>, scalar_prefetch = 0 : i64, scratch_operands = 0 : i64, tpu.core_type = #tpu.core_type<tc>, window_params = [{transform_indices = @transform_0, window_bounds = array<i64: 256, 4>}, {transform_indices = @transform_1, window_bounds = array<i64: 1, 4, 128>}, {pipeline_mode = #tpu.pipeline_mode<synchronous>, transform_indices = @transform_2, window_bounds = array<i64: 1, 128>}, {transform_indices = @transform_3, window_bounds = array<i64: 16, 1, 16, 128>}]} {
    %c0 = arith.constant 0 : index
    %c0_0 = arith.constant 0 : index
    %0 = vector.load %arg2[%c0, %c0_0] : memref<256x4xbf16, #tpu.memory_space<vmem>>, vector<256x4xbf16>
    %c0_1 = arith.constant 0 : index
    %c0_2 = arith.constant 0 : index
    %c0_3 = arith.constant 0 : index
    %1 = vector.load %arg3[%c0_1, %c0_2, %c0_3] : memref<1x4x128xbf16, #tpu.memory_space<vmem>>, vector<1x4x128xbf16>
    %2 = vector.shape_cast %1 : vector<1x4x128xbf16> to vector<4x128xbf16>
    %cst = arith.constant dense<0.000000e+00> : vector<256x128xf32>
    %3 = tpu.matmul %0, %2, %cst {dimension_numbers = #tpu.dot_dimension_numbers<[1], [0], [0], [1], [0, 0, 1, 1], [], []>} : vector<256x4xbf16>, vector<4x128xbf16>, vector<256x128xf32> -> vector<256x128xf32>
    %c0_4 = arith.constant 0 : index
    %c0_5 = arith.constant 0 : index
    %4 = vector.load %arg4[%c0_4, %c0_5] : memref<1x128xf32, #tpu.memory_space<vmem>>, vector<1x128xf32>
    %5 = vector.broadcast %4 : vector<1x128xf32> to vector<256x128xf32>
    %6 = arith.addf %3, %5 : vector<256x128xf32>
    %cst_6 = arith.constant 0.000000e+00 : f32
    %7 = vector.broadcast %cst_6 : f32 to vector<256x128xf32>
    %8 = arith.subf %7, %6 : vector<256x128xf32>
    %9 = math.exp %8 : vector<256x128xf32>
    %cst_7 = arith.constant 1.000000e+00 : f32
    %10 = vector.broadcast %cst_7 : f32 to vector<256x128xf32>
    %11 = arith.addf %10, %9 : vector<256x128xf32>
    %12 = tpu.reciprocal %11 {approx = true} : vector<256x128xf32> -> vector<256x128xf32>
    %13 = arith.mulf %6, %12 : vector<256x128xf32>
    %14 = vector.shape_cast %13 : vector<256x128xf32> to vector<16x16x128xf32>
    %c0_8 = arith.constant 0 : index
    %c0_9 = arith.constant 0 : index
    %c0_10 = arith.constant 0 : index
    %c0_11 = arith.constant 0 : index
    %15 = vector.load %arg5[%c0_8, %c0_9, %c0_10, %c0_11] : memref<16x1x16x128xf32, #tpu.memory_space<vmem>>, vector<16x1x16x128xf32>
    %16 = vector.shape_cast %15 : vector<16x1x16x128xf32> to vector<16x16x128xf32>
    %17 = vector.shape_cast %14 : vector<16x16x128xf32> to vector<16x1x16x128xf32>
    tpu.vector_store %arg5[%c0_8, %c0_9, %c0_10, %c0_11], %17 {strides = array<i32>} : memref<16x1x16x128xf32, #tpu.memory_space<vmem>>, vector<16x1x16x128xf32>,
    return
  }
  func.func @transform_0(%arg0: i32, %arg1: i32) -> (i32, i32) {
    %c0_i32 = arith.constant 0 : i32
    %c0_i32_0 = arith.constant 0 : i32
    return %arg0, %c0_i32 : i32, i32
  }
  func.func @transform_1(%arg0: i32, %arg1: i32) -> (i32, i32, i32) {
    %c0_i32 = arith.constant 0 : i32
    %c0_i32_0 = arith.constant 0 : i32
    %c0_i32_1 = arith.constant 0 : i32
    return %arg1, %c0_i32, %c0_i32_0 : i32, i32, i32
  }
  func.func @transform_2(%arg0: i32, %arg1: i32) -> (i32, i32) {
    %c0_i32 = arith.constant 0 : i32
    %c0_i32_0 = arith.constant 0 : i32
    %c0_i32_1 = arith.constant 0 : i32
    return %c0_i32, %c0_i32_0 : i32, i32
  }
  func.func @transform_3(%arg0: i32, %arg1: i32) -> (i32, i32, i32, i32) {
    %c0_i32 = arith.constant 0 : i32
    %c0_i32_0 = arith.constant 0 : i32
    %c0_i32_1 = arith.constant 0 : i32
    return %arg0, %arg1, %c0_i32, %c0_i32_0 : i32, i32, i32, i32
  }
}

</mosaic_0001>

<bundles_post_ra>
// kernel: tile.8
= control target key start
LH: loop header
LB: loop body
LE: loop exit
PB: predicated region body
PF: predicated region fallthrough
CT: control target
= control target key end

     0   :  { %s22_s0 = inlined_call_operand.vmem [shape: f32[64], index: 0, kind: input, shape index: {}]   ;;  %s23_s1 = inlined_call_operand.vmem [shape: f32[2,64], index: 1, kind: output, shape index: {}]  }
   0x1   :  { %v4_v0 = vld [vmem:[%s22_s0] ss:$0 sm:$0xff] }
   0x2   :  { %5 = vst [vmem:[%s23_s1] sm:$0x3] %v4_v0 }

// kernel: tile.9
= control target key start
LH: loop header
LB: loop body
LE: loop exit
PB: predicated region body
PF: predicated region fallthrough
CT: control target
= control target key end

     0   :  { %vm7_vm0 = vcmask 523264   ;;  %vm13_vm1 = vcmask 1048064   ;;  %s39_s0 = inlined_call_operand.vmem [shape: f32[2,64], index: 0, kind: input, shape index: {}]   ;;  %s40_s1 = inlined_call_operand.vmem [shape: f32[1,128], index: 1, kind: output, shape index: {}]  }
   0x1   :  { %v4_v0 = vld [vmem:[%s39_s0] sm:$0x3]  ;;  %s22_s0 = smov 64  }
   0x2   :  { %5 = vst [vmem:[#allocation1] sm:$0x3] %v4_v0 }
   0x9   :  { %v10_v1 = vld [vmem:[#allocation1 + $0x1] sm:$0x1]   ;;  %v6_v2 = vld [vmem:[#allocation1] sm:$0x1]  }
   0xa   :  { %11 = vrot.lane.b32.xlu0 %v10_v1, %s22_s0  ;;  %8 = vst.msk [vmem:[#allocation0] sm:$0x1] %vm7_vm0, %v6_v2  }
  0x7c   :  { %v12_v3 = vpop.permute.xlu0 %11  }
  0x7d   :  { %14 = vst.msk [vmem:[#allocation0] sm:$0x1] %vm13_vm1, %v12_v3  }
  0x84   :  { %v18_v4 = vld [vmem:[#allocation0] sm:$0x1] }
  0x85   :  { %20 = vst [vmem:[%s40_s1] sm:$0x1] %v18_v4 }

// kernel: conv_transpose_bn_silu.1
= control target key start
LH: loop header
LB: loop body
LE: loop exit
PB: predicated region body
PF: predicated region fallthrough
CT: control target
= control target key end

     0   :  { %s1385_s12 = smov 0   ;;  %s1387_s13 = smov 0   ;;  %s1802_s0 = inlined_call_operand.vmem [shape: bf16[512,4], index: 0, kind: input, shape index: {}]   ;;  %s1803_s1 = inlined_call_operand.vmem [shape: bf16[2,4,128], index: 1, kind: input, shape index: {}]   ;;  %s1804_s2 = inlined_call_operand.vmem [shape: f32[1,128], index: 2, kind: input, shape index: {}]   ;;  %s1805_s3 = inlined_call_operand.vmem [shape: f32[32,2,16,128], index: 3, kind: output, shape index: {}]  }
   0x1   :  { %s1389_s14 = smov 0   ;;  %s1391_s15 = smov 0  }
   0x2   :  { %s1393_s16 = smov 0   ;;  %s1395_s17 = smov 0  }
   0x3   :  { %s1397_s18 = smov 0  }
   0x4 LB: > { %s22_s19 = sadd.s32 1, %s1355_s16  ;;  %s25_s20 = sadd.s32 1, %s1359_s17  ;;  %s1363_s18 = sphi %s1397_s18, %s13_s18   ;;  %s1359_s17 = sphi %s1395_s17, %s1812_s17   ;;  %s1355_s16 = sphi %s1393_s16, %s1811_s16   ;;  %s1351_s15 = sphi %s1391_s15, %s1810_s15   ;;  %s1347_s14 = sphi %s1389_s14, %s1809_s14   ;;  %s1343_s13 = sphi %s1387_s13, %s1808_s13   ;;  %s1339_s12 = sphi %s1385_s12, %s1807_s12  }
   0x5   : > { %p23_p0 = scmp.ge.s32.totalorder %s22_s19, 2  ;;  %s1004_s21 = sadd.s32 4294967295, %s1363_s18  }
   0x6   : > { %p117_p1 = scmp.ne.s32.totalorder %s1343_s13, %s1339_s12  ;;  %p118_p2 = scmp.eq.s32.totalorder %s1004_s21, 3 }
   0x7   : > { %s1814_s19 = smov (%p23_p0, %s22_s19), 0  ;;  %s1816_s20 = smov (!%p23_p0, %s25_s20), %s1359_s17 }
   0x8   : > { %s103_s22 = ssub.s32 %s1355_s16, %s1814_s19  ;;  %p27_p3 = scmp.ge.s32.totalorder %s1816_s20, 2 }
   0x9   : > { %p1008_p4 = scmp.ge.s32.totalorder %s1363_s18, 1  ;;  %p1431_p5 = por %p118_p2, %p117_p1 }
   0xa   : > { %p161_p6 = scmp.lt.s32.totalorder %s1363_s18, 5  ;;  %s1818_s20 = smov (%p27_p3, %s1816_s20), 0 }
   0xb   : > { %s102_s24 = ssub.s32 %s1359_s17, %s1818_s20  ;;  %s107_s26 = sadd.s32 1, %s1343_s13 }
   0xc   : > { %p162_p7 = pnand %p1008_p4, %p161_p6  ;;  %s104_s25 = sor.u32 %s103_s22, %s102_s24 }
   0xd   : > { %p105_p8 = scmp.eq.s32.totalorder %s104_s25, 0  ;;  %p194_p9 = scmp.lt.s32.totalorder (!%p162_p7), %s1347_s14, 1  ;;  %vm369_vm0 = vcmask (!%p162_p7), 1041408   ;;  %vm320_vm1 = vcmask (!%p162_p7), 31744   ;;  %v1490_v18 = vld [vmem:[%s1804_s2] ss:$0 sm:$0xff] (!%p162_p7) }
   0xe   : > { %165 = sbr.rel (%p162_p7) target bundleno = 342 (0x156), region = 32  ;;  %s1010_s28 = sshll.u32 (!%p162_p7), %s1351_s15, 5 }
   0xf   : > { %s1442_s27 = scalar_select %p105_p8, %s1343_s13, %s107_s26  }
  0x10   : > { %p189_p10 = scmp.lt.s32.totalorder (!%p162_p7), %s1010_s28, 63  ;;  %s185_s22 = sand.u32 (!%p162_p7), 1, %s1339_s12  }
  0x11   : > { %s1574_s12 = sshll.u32 (!%p162_p7), %s185_s22, 8 }
  0x12   : > { %s1606_s24 = scalar_lea.vmem (!%p162_p7), [#allocation2], %s1574_s12 }
  0x15   : > { %s195_s29 = scalar_select %p194_p9, %s1347_s14, 1 }
  0x16   : > { %s1820_s28 = smov (!%p189_p10, %s1010_s28), 63  ;;  %s1048_s25 = sshll.u32 (%p1431_p5), %s1347_s14, 1 }
  0x17   : > { %s1012_s30 = sshll.u32 %s195_s29, 1  ;;  %s1011_s7 = sshll.u32 %s1820_s28, 2 }
  0x18   : > { %s197_s6 = scalar_lea.vmem %s1803_s1, %s1012_s30  ;;  %s1453_s10 = scalar_lea.vmem %s1802_s0, %s1011_s7 }
  0x19   : > { %v232_v0 = vld [vmem:[%s197_s6] sm:$0x3]  ;;  %v1167_v4 = vld [vmem:[%s1453_s10 + $0x8] sm:$0xff]   ;;  %v1169_v6 = vld [vmem:[%s1453_s10 + $0x10] sm:$0xff]   ;;  %s1053_s26 = sshll.u32 (%p1431_p5), %s1351_s15, 6 }
  0x1a   : > { %1107 = vmatprep.subr.msk.bf16.mxu0 %vm369_vm0, %v232_v0  ;;  %1108 = vmatprep.subr.msk.bf16.mxu1 %vm369_vm0, %v232_v0  ;;  %v371_v1 = vsel %vm369_vm0, %v232_v0, 0  ;;  %v1165_v2 = vld [vmem:[%s1453_s10] sm:$0xff]   ;;  %v1168_v5 = vld [vmem:[%s1453_s10 + $0x48] sm:$0xff]   ;;  %v1170_v7 = vld [vmem:[%s1453_s10 + $0x50] sm:$0xff]   ;;  %s768_s23 = sadd.s32 (%p1431_p5), %s1053_s26, %s1048_s25 }
  0x1b   : > { %1072 = vmatpush3.bf16.msra.mxu0 %v371_v1  ;;  %1106 = vmatpush3.bf16.msra.mxu1 %v371_v1  ;;  %v1166_v3 = vld [vmem:[%s1453_s10 + $0x40] sm:$0xff]   ;;  %v1171_v8 = vld [vmem:[%s1453_s10 + $0x18] sm:$0xff]   ;;  %v1175_v12 = vld [vmem:[%s1453_s10 + $0x28] sm:$0xff]   ;;  %s1050_s28 = sshll.u32 (%p1431_p5), %s768_s23, 3 }
  0x1c   : > { %1073 = vmatprep.mubr.msk.bf16.mxu0 %vm320_vm1, %v1165_v2  ;;  %1089 = vmatprep.mubr.msk.bf16.mxu1 %vm320_vm1, %v1166_v3  ;;  %v1172_v9 = vld [vmem:[%s1453_s10 + $0x58] sm:$0xff]   ;;  %v1173_v10 = vld [vmem:[%s1453_s10 + $0x20] sm:$0xff]   ;;  %v1176_v13 = vld [vmem:[%s1453_s10 + $0x68] sm:$0xff]   ;;  %s1724_s4 = scalar_lea.vmem (%p1431_p5), %s1805_s3, %s1050_s28 }
  0x1d   : > { %v1174_v11 = vld [vmem:[%s1453_s10 + $0x60] sm:$0xff]   ;;  %v1177_v14 = vld [vmem:[%s1453_s10 + $0x30] sm:$0xff]   ;;  %v1179_v16 = vld [vmem:[%s1453_s10 + $0x38] sm:$0xff]  }
  0x1e   : > { %1074 = vmatmul.mubr.msk.bf16.vlgmr.msra.gmra.mrb[0].mxu0 %vm320_vm1, %v1167_v4  ;;  %1090 = vmatmul.mubr.msk.bf16.vlgmr.msra.gmra.mrb[0].mxu1 %vm320_vm1, %v1168_v5  ;;  %v1178_v15 = vld [vmem:[%s1453_s10 + $0x70] sm:$0xff]   ;;  %v1180_v17 = vld [vmem:[%s1453_s10 + $0x78] sm:$0xff]  }
  0x1f   : > { %1077 = vmatprep.mubr.msk.bf16.mxu0 %vm320_vm1, %v1169_v6  ;;  %1093 = vmatprep.mubr.msk.bf16.mxu1 %vm320_vm1, %v1170_v7 }
  0x26   : > { %1078 = vmatmul.mubr.msk.bf16.gmra.mrb[4].mxu0 %vm320_vm1, %v1171_v8  ;;  %1094 = vmatmul.mubr.msk.bf16.gmra.mrb[4].mxu1 %vm320_vm1, %v1172_v9 }
  0x27   : > { %1081 = vmatprep.mubr.msk.bf16.mxu0 %vm320_vm1, %v1173_v10  ;;  %1097 = vmatprep.mubr.msk.bf16.mxu1 %vm320_vm1, %v1174_v11 }
  0x2e   : > { %1082 = vmatmul.mubr.msk.bf16.gmra.mrb[8].mxu0 %vm320_vm1, %v1175_v12  ;;  %1098 = vmatmul.mubr.msk.bf16.gmra.mrb[8].mxu1 %vm320_vm1, %v1176_v13 }
  0x2f   : > { %1085 = vmatprep.mubr.msk.bf16.mxu0 %vm320_vm1, %v1177_v14  ;;  %1101 = vmatprep.mubr.msk.bf16.mxu1 %vm320_vm1, %v1178_v15 }
  0x36   : > { %1086 = vmatmul.mubr.msk.bf16.gmra.mrb[12].mxu0 %vm320_vm1, %v1179_v16  ;;  %1102 = vmatmul.mubr.msk.bf16.gmra.mrb[12].mxu1 %vm320_vm1, %v1180_v17 }
  0xf1   : > { %v1075_v19 = vpop.f32.mrb[0].mxu0  ;;  %v1091_v21 = vpop.f32.mrb[0].mxu1 }
  0xf2   : > { %v1493_v20 = vadd.f32 %v1075_v19, %v1490_v18  ;;  %v407_v22 = vpop.f32.mrb[1].mxu0  ;;  %v1496_v23 = vadd.f32 %v1091_v21, %v1490_v18  ;;  %v471_v25 = vpop.f32.mrb[1].mxu1 }
  0xf3   : > { %v1499_v24 = vadd.f32 %v1490_v18, %v407_v22  ;;  %v1076_v26 = vpop.f32.mrb[2].mxu0  ;;  %v1503_v28 = vadd.f32 %v1490_v18, %v471_v25  ;;  %v1092_v30 = vpop.f32.mrb[2].mxu1 }
  0xf4   : > { %v536_v27 = vsub.f32 0.0, %v1493_v20  ;;  %v1506_v29 = vadd.f32 %v1076_v26, %v1490_v18  ;;  %v410_v31 = vpop.f32.mrb[3].mxu0  ;;  %v552_v32 = vsub.f32 0.0, %v1496_v23  ;;  %v1511_v34 = vadd.f32 %v1092_v30, %v1490_v18  ;;  %v474_v36 = vpop.f32.mrb[3].mxu1 }
  0xf5   : > { %v534_v33 = vsub.f32 0.0, %v1499_v24  ;;  %v1514_v35 = vadd.f32 %v1490_v18, %v410_v31  ;;  %v550_v38 = vsub.f32 0.0, %v1503_v28  ;;  %v1519_v40 = vadd.f32 %v1490_v18, %v474_v36 }
  0xf6   : > { %v570_v37 = vmul.f32 1.442695, %v536_v27  ;;  %v537_v39 = vsub.f32 0.0, %v1506_v29  ;;  %v602_v41 = vmul.f32 1.442695, %v552_v32  ;;  %v553_v43 = vsub.f32 0.0, %v1511_v34 }
  0xf7   : > { %v566_v42 = vmul.f32 1.442695, %v534_v33  ;;  %v535_v44 = vsub.f32 0.0, %v1514_v35  ;;  %v598_v45 = vmul.f32 1.442695, %v550_v38  ;;  %v551_v47 = vsub.f32 0.0, %v1519_v40 }
  0xf8   : > { %1181 = vpow2.f32 %v570_v37  ;;  %v572_v46 = vmul.f32 1.442695, %v537_v39  ;;  %v604_v48 = vmul.f32 1.442695, %v553_v43 }
  0xf9   : > { %1183 = vpow2.f32 %v602_v41  ;;  %v1079_v49 = vpop.f32.mrb[4].mxu0  ;;  %v568_v50 = vmul.f32 1.442695, %v535_v44  ;;  %v1095_v52 = vpop.f32.mrb[4].mxu1  ;;  %v600_v54 = vmul.f32 1.442695, %v551_v47 }
  0xfa   : > { %1185 = vpow2.f32 %v566_v42  ;;  %v1525_v51 = vadd.f32 %v1079_v49, %v1490_v18  ;;  %v423_v53 = vpop.f32.mrb[5].mxu0  ;;  %v1528_v55 = vadd.f32 %v1095_v52, %v1490_v18  ;;  %v487_v57 = vpop.f32.mrb[5].mxu1 }
  0xfb   : > { %1187 = vpow2.f32 %v598_v45  ;;  %v1531_v56 = vadd.f32 %v1490_v18, %v423_v53  ;;  %v1080_v58 = vpop.f32.mrb[6].mxu0  ;;  %v1535_v60 = vadd.f32 %v1490_v18, %v487_v57  ;;  %v1096_v62 = vpop.f32.mrb[6].mxu1 }
  0xfc   : > { %1189 = vpow2.f32 %v572_v46  ;;  %v540_v59 = vsub.f32 0.0, %v1525_v51  ;;  %v1538_v61 = vadd.f32 %v1080_v58, %v1490_v18  ;;  %v426_v63 = vpop.f32.mrb[7].mxu0  ;;  %v556_v0 = vsub.f32 0.0, %v1528_v55  ;;  %v490_v2 = vpop.f32.mrb[7].mxu1 }
  0xfd   : > { %1191 = vpow2.f32 %v604_v48  ;;  %v538_v1 = vsub.f32 0.0, %v1531_v56  ;;  %v554_v4 = vsub.f32 0.0, %v1535_v60  ;;  %v1545_v12 = vadd.f32 %v1096_v62, %v1490_v18 }
  0xfe   : > { %1193 = vpow2.f32 %v568_v50  ;;  %v578_v3 = vmul.f32 1.442695, %v540_v59  ;;  %v541_v5 = vsub.f32 0.0, %v1538_v61  ;;  %v610_v6 = vmul.f32 1.442695, %v556_v0 }
  0xff   : > { %1195 = vpow2.f32 %v600_v54  ;;  %v574_v7 = vmul.f32 1.442695, %v538_v1  ;;  %v606_v8 = vmul.f32 1.442695, %v554_v4  ;;  %v1548_v17 = vadd.f32 %v1490_v18, %v426_v63 }
 0x100   : > { %1197 = vpow2.f32 %v578_v3  ;;  %v580_v9 = vmul.f32 1.442695, %v541_v5  ;;  %v1551_v26 = vadd.f32 %v1490_v18, %v490_v2  ;;  %v557_v39 = vsub.f32 0.0, %v1545_v12 }
 0x101   : > { %1199 = vpow2.f32 %v610_v6  ;;  %v1083_v10 = vpop.f32.mrb[8].mxu0  ;;  %v1099_v13 = vpop.f32.mrb[8].mxu1  ;;  %v539_v44 = vsub.f32 0.0, %v1548_v17 }
 0x102   : > { %v1182_v11 = vpop.eup %1181  ;;  %1201 = vpow2.f32 %v574_v7  ;;  %v439_v14 = vpop.f32.mrb[9].mxu0  ;;  %v1554_v33 = vadd.f32 %v1083_v10, %v1490_v18  ;;  %v1558_v41 = vadd.f32 %v1099_v13, %v1490_v18  ;;  %v555_v47 = vsub.f32 0.0, %v1551_v26 }
 0x103   : > { %v1184_v15 = vpop.eup %1183  ;;  %v632_v16 = vadd.f32 1.0, %v1182_v11  ;;  %1203 = vpow2.f32 %v606_v8  ;;  %v503_v19 = vpop.f32.mrb[9].mxu1  ;;  %v612_v57 = vmul.f32 1.442695, %v557_v39  ;;  %v576_v1 = vmul.f32 1.442695, %v539_v44 }
 0x104   : > { %v1084_v21 = vpop.f32.mrb[10].mxu0  ;;  %v1186_v22 = vpop.eup %1185  ;;  %v648_v25 = vadd.f32 1.0, %v1184_v15  ;;  %1205 = vpow2.f32 %v580_v9  ;;  %v544_v50 = vsub.f32 0.0, %v1554_v33  ;;  %v560_v58 = vsub.f32 0.0, %v1558_v41 }
 0x105   : > { %v1100_v27 = vpop.f32.mrb[10].mxu1  ;;  %v442_v30 = vpop.f32.mrb[11].mxu0  ;;  %1207 = vrcp.f32 %v632_v16  ;;  %v630_v32 = vadd.f32 1.0, %v1186_v22  ;;  %v1568_v2 = vadd.f32 %v1490_v18, %v439_v14  ;;  %v608_v7 = vmul.f32 1.442695, %v555_v47 }
 0x106   : > { %v1188_v31 = vpop.eup %1187  ;;  %v506_v36 = vpop.f32.mrb[11].mxu1  ;;  %1209 = vrcp.f32 %v648_v25  ;;  %v1577_v8 = vadd.f32 %v1490_v18, %v503_v19  ;;  %v586_v14 = vmul.f32 1.442695, %v544_v50  ;;  %v1584_v15 = vadd.f32 %v1084_v21, %v1490_v18 }
 0x107   : > { %v1190_v37 = vpop.eup %1189  ;;  %v646_v38 = vadd.f32 1.0, %v1188_v31  ;;  %1211 = vrcp.f32 %v630_v32  ;;  %v618_v31 = vmul.f32 1.442695, %v560_v58  ;;  %v1589_v19 = vadd.f32 %v1100_v27, %v1490_v18 }
 0x108   : > { %v1192_v42 = vpop.eup %1191  ;;  %v633_v43 = vadd.f32 1.0, %v1190_v37  ;;  %v1593_v39 = vadd.f32 %v1490_v18, %v442_v30  ;;  %v1598_v44 = vadd.f32 %v1490_v18, %v506_v36 }
 0x109   : > { %v1194_v45 = vpop.eup %1193  ;;  %1213 = vrcp.f32 %v646_v38  ;;  %v649_v46 = vadd.f32 1.0, %v1192_v42  ;;  %v1087_v52 = vpop.f32.mrb[12].mxu0  ;;  %v542_v38 = vsub.f32 0.0, %v1568_v2  ;;  %v561_v36 = vsub.f32 0.0, %v1589_v19 }
 0x10a   : > { %v1196_v48 = vpop.eup %1195  ;;  %1215 = vrcp.f32 %v633_v43  ;;  %v631_v49 = vadd.f32 1.0, %v1194_v45  ;;  %v1103_v59 = vpop.f32.mrb[12].mxu1  ;;  %v558_v43 = vsub.f32 0.0, %v1577_v8  ;;  %v1603_v47 = vadd.f32 %v1087_v52, %v1490_v18 }
 0x10b   : > { %v1198_v53 = vpop.eup %1197  ;;  %1217 = vrcp.f32 %v649_v46  ;;  %v647_v54 = vadd.f32 1.0, %v1196_v48  ;;  %v1565_v62 = vpop.f32.mrb[13].mxu0  ;;  %v545_v46 = vsub.f32 0.0, %v1584_v15  ;;  %v582_v50 = vmul.f32 1.442695, %v542_v38 }
 0x10c   : > { %v1200_v63 = vpop.eup %1199  ;;  %1219 = vrcp.f32 %v631_v49  ;;  %v636_v0 = vadd.f32 1.0, %v1198_v53  ;;  %v1570_v3 = vpop.f32.mrb[13].mxu1  ;;  %v543_v52 = vsub.f32 0.0, %v1593_v39 }
 0x10d   : > { %v1572_v4 = vpop.f32.mrb[14].mxu0  ;;  %v1202_v5 = vpop.eup %1201  ;;  %1221 = vrcp.f32 %v647_v54  ;;  %v652_v6 = vadd.f32 1.0, %v1200_v63  ;;  %v614_v54 = vmul.f32 1.442695, %v558_v43  ;;  %v548_v63 = vsub.f32 0.0, %v1603_v47 }
 0x10e   : > { %v1579_v9 = vpop.f32.mrb[14].mxu1  ;;  %v1581_v10 = vpop.f32.mrb[15].mxu0  ;;  %1223 = vrcp.f32 %v636_v0  ;;  %v634_v13 = vadd.f32 1.0, %v1202_v5 }
 0x10f   : > { %v1204_v11 = vpop.eup %1203  ;;  %v1586_v16 = vpop.f32.mrb[15].mxu1  ;;  %1225 = vrcp.f32 %v652_v6 }
 0x110   : > { %v1206_v22 = vpop.eup %1205  ;;  %v650_v25 = vadd.f32 1.0, %v1204_v11  ;;  %1227 = vrcp.f32 %v634_v13 }
 0x111   : > { %v1208_v32 = vpop.eup %1207  ;;  %v637_v37 = vadd.f32 1.0, %v1206_v22 }
 0x112   : > { %v1210_v21 = vpop.eup %1209  ;;  %v696_v42 = vmul.f32 %v1208_v32, %v1493_v20  ;;  %1229 = vrcp.f32 %v650_v25  ;;  %v594_v25 = vmul.f32 1.442695, %v548_v63 }
 0x113   : > { %v1212_v27 = vpop.eup %1211  ;;  %v712_v45 = vmul.f32 %v1210_v21, %v1496_v23  ;;  %1231 = vrcp.f32 %v637_v37  ;;  %v1612_v23 = vadd.f32 %v1103_v59, %v1490_v18 }
 0x114   : > { %v1214_v30 = vpop.eup %1213  ;;  %728 = vst [vmem:[%s1606_s24 + $0x10] sm:$0xff] %v696_v42  ;;  %v694_v20 = vmul.f32 %v1212_v27, %v1499_v24  ;;  %1233 = vpow2.f32 %v612_v57  ;;  %v559_v57 = vsub.f32 0.0, %v1598_v44 }
 0x115   : > { %v1216_v48 = vpop.eup %1215  ;;  %744 = vst [vmem:[%s1606_s24 + $0x90] sm:$0xff] %v712_v45  ;;  %v710_v49 = vmul.f32 %v1214_v30, %v1503_v28  ;;  %1235 = vpow2.f32 %v576_v1  ;;  %v588_v28 = vmul.f32 1.442695, %v545_v46  ;;  %v564_v5 = vsub.f32 0.0, %v1612_v23 }
 0x116   : > { %v1218_v53 = vpop.eup %1217  ;;  %726 = vst [vmem:[%s1606_s24] sm:$0xff] %v694_v20  ;;  %v697_v24 = vmul.f32 %v1216_v48, %v1506_v29  ;;  %1237 = vpow2.f32 %v608_v7  ;;  %v620_v29 = vmul.f32 1.442695, %v561_v36  ;;  %v1642_v30 = vadd.f32 %v1490_v18, %v1565_v62 }
 0x117   : > { %v1220_v58 = vpop.eup %1219  ;;  %742 = vst [vmem:[%s1606_s24 + $0x80] sm:$0xff] %v710_v49  ;;  %v713_v59 = vmul.f32 %v1218_v53, %v1511_v34  ;;  %1239 = vpow2.f32 %v586_v14  ;;  %v584_v34 = vmul.f32 1.442695, %v543_v52  ;;  %v616_v14 = vmul.f32 1.442695, %v559_v57 }
 0x118   : > { %v1222_v0 = vpop.eup %1221  ;;  %729 = vst [vmem:[%s1606_s24 + $0x18] sm:$0xff] %v697_v24  ;;  %v695_v1 = vmul.f32 %v1220_v58, %v1514_v35  ;;  %1241 = vpow2.f32 %v618_v31  ;;  %v626_v32 = vmul.f32 1.442695, %v564_v5  ;;  %v1646_v36 = vadd.f32 %v1490_v18, %v1570_v3 }
 0x119   : > { %v1224_v6 = vpop.eup %1223  ;;  %745 = vst [vmem:[%s1606_s24 + $0x98] sm:$0xff] %v713_v59  ;;  %v711_v7 = vmul.f32 %v1222_v0, %v1519_v40  ;;  %1243 = vpow2.f32 %v582_v50  ;;  %v1650_v50 = vadd.f32 %v1572_v4, %v1490_v18  ;;  %v1654_v62 = vadd.f32 %v1579_v9, %v1490_v18 }
 0x11a   : > { %v1226_v11 = vpop.eup %1225  ;;  %727 = vst [vmem:[%s1606_s24 + $0x8] sm:$0xff] %v695_v1  ;;  %v700_v13 = vmul.f32 %v1224_v6, %v1525_v51  ;;  %1245 = vpow2.f32 %v614_v54  ;;  %v546_v3 = vsub.f32 0.0, %v1642_v30  ;;  %v1659_v57 = vadd.f32 %v1490_v18, %v1581_v10 }
 0x11b   : > { %v1228_v35 = vpop.eup %1227  ;;  %743 = vst [vmem:[%s1606_s24 + $0x88] sm:$0xff] %v711_v7  ;;  %v716_v22 = vmul.f32 %v1226_v11, %v1528_v55  ;;  %1247 = vpow2.f32 %v588_v28  ;;  %v562_v59 = vsub.f32 0.0, %v1646_v36  ;;  %v1664_v28 = vadd.f32 %v1490_v18, %v1586_v16 }
 0x11c   : > { %v1230_v31 = vpop.eup %1229  ;;  %732 = vst [vmem:[%s1606_s24 + $0x30] sm:$0xff] %v700_v13  ;;  %v698_v40 = vmul.f32 %v1228_v35, %v1531_v56  ;;  %1249 = vpow2.f32 %v620_v29  ;;  %v549_v0 = vsub.f32 0.0, %v1650_v50  ;;  %v565_v10 = vsub.f32 0.0, %v1654_v62 }
 0x11d   : > { %v1232_v37 = vpop.eup %1231  ;;  %748 = vst [vmem:[%s1606_s24 + $0xb0] sm:$0xff] %v716_v22  ;;  %v714_v51 = vmul.f32 %v1230_v31, %v1535_v60  ;;  %1251 = vpow2.f32 %v584_v34  ;;  %v590_v7 = vmul.f32 1.442695, %v546_v3  ;;  %v547_v34 = vsub.f32 0.0, %v1659_v57 }
 0x11e   : > { %v1234_v38 = vpop.eup %1233  ;;  %730 = vst [vmem:[%s1606_s24 + $0x20] sm:$0xff] %v698_v40  ;;  %v701_v21 = vmul.f32 %v1232_v37, %v1538_v61  ;;  %1253 = vpow2.f32 %v616_v14  ;;  %v622_v16 = vmul.f32 1.442695, %v562_v59  ;;  %v563_v13 = vsub.f32 0.0, %v1664_v28 }
 0x11f   : > { %v1236_v55 = vpop.eup %1235  ;;  %746 = vst [vmem:[%s1606_s24 + $0xa0] sm:$0xff] %v714_v51  ;;  %v653_v42 = vadd.f32 1.0, %v1234_v38  ;;  %1255 = vpow2.f32 %v594_v25  ;;  %v596_v22 = vmul.f32 1.442695, %v549_v0  ;;  %v628_v40 = vmul.f32 1.442695, %v565_v10 }
 0x120   : > { %v1238_v43 = vpop.eup %1237  ;;  %733 = vst [vmem:[%s1606_s24 + $0x38] sm:$0xff] %v701_v21  ;;  %v635_v56 = vadd.f32 1.0, %v1236_v55  ;;  %1257 = vpow2.f32 %v626_v32  ;;  %v592_v51 = vmul.f32 1.442695, %v547_v34  ;;  %v624_v21 = vmul.f32 1.442695, %v563_v13 }
 0x121   : > { %v1240_v27 = vpop.eup %1239  ;;  %1259 = vrcp.f32 %v653_v42  ;;  %v651_v45 = vadd.f32 1.0, %v1238_v43 }
 0x122   : > { %v1242_v46 = vpop.eup %1241  ;;  %1261 = vrcp.f32 %v635_v56  ;;  %v640_v60 = vadd.f32 1.0, %v1240_v27 }
 0x123   : > { %v1244_v61 = vpop.eup %1243  ;;  %1263 = vrcp.f32 %v651_v45  ;;  %v656_v20 = vadd.f32 1.0, %v1242_v46  ;;  %v872_v34 = vld [vmem:[%s1606_s24 + $0x30] sm:$0xff] (%p1431_p5) }
 0x124   : > { %v1246_v48 = vpop.eup %1245  ;;  %1265 = vrcp.f32 %v640_v60  ;;  %v638_v49 = vadd.f32 1.0, %v1244_v61  ;;  %873 = vst [vmem:[%s1724_s4 + $0x60] sm:$0xff] (%p1431_p5), %v872_v34 }
 0x125   : > { %v1248_v52 = vpop.eup %1247  ;;  %1267 = vrcp.f32 %v656_v20  ;;  %v654_v53 = vadd.f32 1.0, %v1246_v48 }
 0x126   : > { %v1250_v24 = vpop.eup %1249  ;;  %1269 = vrcp.f32 %v638_v49  ;;  %v641_v54 = vadd.f32 1.0, %v1248_v52 }
 0x127   : > { %v1252_v58 = vpop.eup %1251  ;;  %1271 = vrcp.f32 %v654_v53  ;;  %v657_v4 = vadd.f32 1.0, %v1250_v24 }
 0x128   : > { %v1254_v9 = vpop.eup %1253  ;;  %1273 = vrcp.f32 %v641_v54  ;;  %v639_v63 = vadd.f32 1.0, %v1252_v58 }
 0x129   : > { %v1256_v1 = vpop.eup %1255  ;;  %1275 = vrcp.f32 %v657_v4  ;;  %v655_v29 = vadd.f32 1.0, %v1254_v9 }
 0x12a   : > { %v1258_v5 = vpop.eup %1257  ;;  %1277 = vrcp.f32 %v639_v63  ;;  %v644_v6 = vadd.f32 1.0, %v1256_v1 }
 0x12b   : > { %v1260_v11 = vpop.eup %1259  ;;  %1279 = vrcp.f32 %v655_v29  ;;  %v660_v18 = vadd.f32 1.0, %v1258_v5 }
 0x12c   : > { %v1262_v14 = vpop.eup %1261  ;;  %v717_v35 = vmul.f32 %v1260_v11, %v1545_v12  ;;  %1281 = vrcp.f32 %v644_v6  ;;  %v874_v11 = vld [vmem:[%s1606_s24 + $0x38] sm:$0xff] (%p1431_p5) }
 0x12d   : > { %v1264_v25 = vpop.eup %1263  ;;  %v699_v31 = vmul.f32 %v1262_v14, %v1548_v17  ;;  %1283 = vrcp.f32 %v660_v18  ;;  %875 = vst [vmem:[%s1724_s4 + $0x68] sm:$0xff] (%p1431_p5), %v874_v11 }
 0x12e   : > { %v1266_v32 = vpop.eup %1265  ;;  %749 = vst [vmem:[%s1606_s24 + $0xb8] sm:$0xff] %v717_v35  ;;  %v715_v37 = vmul.f32 %v1264_v25, %v1551_v26  ;;  %1285 = vpow2.f32 %v590_v7 }
 0x12f   : > { %v1268_v38 = vpop.eup %1267  ;;  %731 = vst [vmem:[%s1606_s24 + $0x28] sm:$0xff] %v699_v31  ;;  %v704_v12 = vmul.f32 %v1266_v32, %v1554_v33  ;;  %1287 = vpow2.f32 %v622_v16  ;;  %v894_v32 = vld [vmem:[%s1606_s24 + $0x88] sm:$0xff] (%p1431_p5) }
 0x130   : > { %v1270_v55 = vpop.eup %1269  ;;  %747 = vst [vmem:[%s1606_s24 + $0xa8] sm:$0xff] %v715_v37  ;;  %v720_v17 = vmul.f32 %v1268_v38, %v1558_v41  ;;  %1289 = vpow2.f32 %v596_v22  ;;  %895 = vst [vmem:[%s1724_s4 + $0x108] sm:$0xff] (%p1431_p5), %v894_v32  ;;  %v896_v37 = vld [vmem:[%s1606_s24 + $0x90] sm:$0xff] (%p1431_p5)  ;;  %v900_v38 = vld [vmem:[%s1606_s24 + $0xa0] sm:$0xff] (%p1431_p5) }
 0x131   : > { %v1272_v42 = vpop.eup %1271  ;;  %736 = vst [vmem:[%s1606_s24 + $0x50] sm:$0xff] %v704_v12  ;;  %v702_v26 = vmul.f32 %v1270_v55, %v1568_v2  ;;  %1291 = vpow2.f32 %v628_v40  ;;  %v892_v40 = vld [vmem:[%s1606_s24 + $0x80] sm:$0xff] (%p1431_p5)  ;;  %897 = vst [vmem:[%s1724_s4 + $0x120] sm:$0xff] (%p1431_p5), %v896_v37 }
 0x132   : > { %v1274_v43 = vpop.eup %1273  ;;  %752 = vst [vmem:[%s1606_s24 + $0xd0] sm:$0xff] %v720_v17  ;;  %v718_v33 = vmul.f32 %v1272_v42, %v1577_v8  ;;  %1293 = vpow2.f32 %v592_v51  ;;  %893 = vst [vmem:[%s1724_s4 + $0x100] sm:$0xff] (%p1431_p5), %v892_v40  ;;  %v898_v51 = vld [vmem:[%s1606_s24 + $0x98] sm:$0xff] (%p1431_p5) }
 0x133   : > { %v1276_v56 = vpop.eup %1275  ;;  %734 = vst [vmem:[%s1606_s24 + $0x40] sm:$0xff] %v702_v26  ;;  %v705_v27 = vmul.f32 %v1274_v43, %v1584_v15  ;;  %1295 = vpow2.f32 %v624_v21  ;;  %899 = vst [vmem:[%s1724_s4 + $0x128] sm:$0xff] (%p1431_p5), %v898_v51  ;;  %v904_v21 = vld [vmem:[%s1606_s24 + $0xb0] sm:$0xff] (%p1431_p5) }
 0x134   : > { %v1278_v41 = vpop.eup %1277  ;;  %750 = vst [vmem:[%s1606_s24 + $0xc0] sm:$0xff] %v718_v33  ;;  %v721_v45 = vmul.f32 %v1276_v56, %v1589_v19  ;;  %901 = vst [vmem:[%s1724_s4 + $0x140] sm:$0xff] (%p1431_p5), %v900_v38 }
 0x135   : > { %v1280_v2 = vpop.eup %1279  ;;  %737 = vst [vmem:[%s1606_s24 + $0x58] sm:$0xff] %v705_v27  ;;  %v703_v46 = vmul.f32 %v1278_v41, %v1593_v39  ;;  %v906_v55 = vld [vmem:[%s1606_s24 + $0xb8] sm:$0xff] (%p1431_p5)  ;;  %905 = vst [vmem:[%s1724_s4 + $0x160] sm:$0xff] (%p1431_p5), %v904_v21 }
 0x136   : > { %v1282_v60 = vpop.eup %1281  ;;  %753 = vst [vmem:[%s1606_s24 + $0xd8] sm:$0xff] %v721_v45  ;;  %v719_v8 = vmul.f32 %v1280_v2, %v1598_v44  ;;  %907 = vst [vmem:[%s1724_s4 + $0x168] sm:$0xff] (%p1431_p5), %v906_v55 }
 0x137   : > { %v1284_v61 = vpop.eup %1283  ;;  %735 = vst [vmem:[%s1606_s24 + $0x48] sm:$0xff] %v703_v46  ;;  %v708_v20 = vmul.f32 %v1282_v60, %v1603_v47  ;;  %v902_v12 = vld [vmem:[%s1606_s24 + $0xa8] sm:$0xff] (%p1431_p5) }
 0x138   : > { %v1286_v15 = vpop.eup %1285  ;;  %751 = vst [vmem:[%s1606_s24 + $0xc8] sm:$0xff] %v719_v8  ;;  %v724_v48 = vmul.f32 %v1284_v61, %v1612_v23  ;;  %v880_v13 = vld [vmem:[%s1606_s24 + $0x50] sm:$0xff] (%p1431_p5)  ;;  %903 = vst [vmem:[%s1724_s4 + $0x148] sm:$0xff] (%p1431_p5), %v902_v12 }
 0x139   : > { %v1288_v49 = vpop.eup %1287  ;;  %740 = vst [vmem:[%s1606_s24 + $0x70] sm:$0xff] %v708_v20  ;;  %v642_v19 = vadd.f32 1.0, %v1286_v15  ;;  %881 = vst [vmem:[%s1724_s4 + $0xa0] sm:$0xff] (%p1431_p5), %v880_v13  ;;  %v912_v26 = vld [vmem:[%s1606_s24 + $0xd0] sm:$0xff] (%p1431_p5) }
 0x13a   : > { %v1290_v52 = vpop.eup %1289  ;;  %756 = vst [vmem:[%s1606_s24 + $0xf0] sm:$0xff] %v724_v48  ;;  %v658_v53 = vadd.f32 1.0, %v1288_v49  ;;  %v876_v18 = vld [vmem:[%s1606_s24 + $0x40] sm:$0xff] (%p1431_p5)  ;;  %913 = vst [vmem:[%s1724_s4 + $0x1a0] sm:$0xff] (%p1431_p5), %v912_v26 }
 0x13b   : > { %v1292_v24 = vpop.eup %1291  ;;  %1297 = vrcp.f32 %v642_v19  ;;  %v645_v39 = vadd.f32 1.0, %v1290_v52  ;;  %877 = vst [vmem:[%s1724_s4 + $0x80] sm:$0xff] (%p1431_p5), %v876_v18  ;;  %v908_v17 = vld [vmem:[%s1606_s24 + $0xc0] sm:$0xff] (%p1431_p5) }
 0x13c   : > { %v1294_v54 = vpop.eup %1293  ;;  %1299 = vrcp.f32 %v658_v53  ;;  %v661_v44 = vadd.f32 1.0, %v1292_v24  ;;  %v882_v14 = vld [vmem:[%s1606_s24 + $0x58] sm:$0xff] (%p1431_p5)  ;;  %909 = vst [vmem:[%s1724_s4 + $0x180] sm:$0xff] (%p1431_p5), %v908_v17 }
 0x13d   : > { %v1296_v3 = vpop.eup %1295  ;;  %1301 = vrcp.f32 %v645_v39  ;;  %v643_v47 = vadd.f32 1.0, %v1294_v54  ;;  %883 = vst [vmem:[%s1724_s4 + $0xa8] sm:$0xff] (%p1431_p5), %v882_v14  ;;  %v914_v43 = vld [vmem:[%s1606_s24 + $0xd8] sm:$0xff] (%p1431_p5) }
 0x13e   : > { %1303 = vrcp.f32 %v661_v44  ;;  %v659_v23 = vadd.f32 1.0, %v1296_v3  ;;  %v878_v16 = vld [vmem:[%s1606_s24 + $0x48] sm:$0xff] (%p1431_p5)  ;;  %915 = vst [vmem:[%s1724_s4 + $0x1a8] sm:$0xff] (%p1431_p5), %v914_v43 }
 0x13f   : > { %1305 = vrcp.f32 %v643_v47  ;;  %879 = vst [vmem:[%s1724_s4 + $0x88] sm:$0xff] (%p1431_p5), %v878_v16  ;;  %v910_v42 = vld [vmem:[%s1606_s24 + $0xc8] sm:$0xff] (%p1431_p5) }
 0x140   : > { %1307 = vrcp.f32 %v659_v23  ;;  %v888_v25 = vld [vmem:[%s1606_s24 + $0x70] sm:$0xff] (%p1431_p5)  ;;  %911 = vst [vmem:[%s1724_s4 + $0x188] sm:$0xff] (%p1431_p5), %v910_v42 }
 0x141   : > { %889 = vst [vmem:[%s1724_s4 + $0xe0] sm:$0xff] (%p1431_p5), %v888_v25  ;;  %v920_v27 = vld [vmem:[%s1606_s24 + $0xf0] sm:$0xff] (%p1431_p5) }
 0x142   : > { %921 = vst [vmem:[%s1724_s4 + $0x1e0] sm:$0xff] (%p1431_p5), %v920_v27 }
 0x145   : > { %v1298_v58 = vpop.eup %1297 }
 0x146   : > { %v1300_v4 = vpop.eup %1299  ;;  %v706_v59 = vmul.f32 %v1298_v58, %v1642_v30  ;;  %v860_v30 = vld [vmem:[%s1606_s24] sm:$0xff] (%p1431_p5) }
 0x147   : > { %v1302_v9 = vpop.eup %1301  ;;  %v722_v63 = vmul.f32 %v1300_v4, %v1646_v36  ;;  %764 = sbr.rel (!%p1431_p5) target bundleno = 342 (0x156), region = 36  ;;  %v862_v36 = vld [vmem:[%s1606_s24 + $0x8] sm:$0xff] (%p1431_p5)  ;;  %861 = vst [vmem:[%s1724_s4] sm:$0xff] (%p1431_p5), %v860_v30 }
 0x148   : > { %v1304_v0 = vpop.eup %1303  ;;  %738 = vst [vmem:[%s1606_s24 + $0x60] sm:$0xff] %v706_v59  ;;  %v709_v1 = vmul.f32 %v1302_v9, %v1650_v50  ;;  %v864_v50 = vld [vmem:[%s1606_s24 + $0x10] sm:$0xff] (%p1431_p5)  ;;  %863 = vst [vmem:[%s1724_s4 + $0x8] sm:$0xff] (%p1431_p5), %v862_v36 }
 0x149   : > { %v1306_v29 = vpop.eup %1305  ;;  %754 = vst [vmem:[%s1606_s24 + $0xe0] sm:$0xff] %v722_v63  ;;  %v725_v10 = vmul.f32 %v1304_v0, %v1654_v62  ;;  %v866_v62 = vld [vmem:[%s1606_s24 + $0x18] sm:$0xff] (%p1431_p5)  ;;  %865 = vst [vmem:[%s1724_s4 + $0x20] sm:$0xff] (%p1431_p5), %v864_v50 }
 0x14a   : > { %v1308_v5 = vpop.eup %1307  ;;  %741 = vst [vmem:[%s1606_s24 + $0x78] sm:$0xff] %v709_v1  ;;  %v707_v6 = vmul.f32 %v1306_v29, %v1659_v57  ;;  %v868_v57 = vld [vmem:[%s1606_s24 + $0x20] sm:$0xff] (%p1431_p5)  ;;  %867 = vst [vmem:[%s1724_s4 + $0x28] sm:$0xff] (%p1431_p5), %v866_v62 }
 0x14b   : > { %757 = vst [vmem:[%s1606_s24 + $0xf8] sm:$0xff] %v725_v10  ;;  %v723_v7 = vmul.f32 %v1308_v5, %v1664_v28  ;;  %v870_v28 = vld [vmem:[%s1606_s24 + $0x28] sm:$0xff] (%p1431_p5)  ;;  %869 = vst [vmem:[%s1724_s4 + $0x40] sm:$0xff] (%p1431_p5), %v868_v57 }
 0x14c   : > { %739 = vst [vmem:[%s1606_s24 + $0x68] sm:$0xff] %v707_v6  ;;  %871 = vst [vmem:[%s1724_s4 + $0x48] sm:$0xff] (%p1431_p5), %v870_v28 }
 0x14d   : > { %755 = vst [vmem:[%s1606_s24 + $0xe8] sm:$0xff] %v723_v7 }
 0x14f   : > { %v884_v35 = vld [vmem:[%s1606_s24 + $0x60] sm:$0xff] }
 0x150   : > { %885 = vst [vmem:[%s1724_s4 + $0xc0] sm:$0xff] %v884_v35  ;;  %v916_v33 = vld [vmem:[%s1606_s24 + $0xe0] sm:$0xff] }
 0x151   : > { %v890_v31 = vld [vmem:[%s1606_s24 + $0x78] sm:$0xff]  ;;  %917 = vst [vmem:[%s1724_s4 + $0x1c0] sm:$0xff] %v916_v33 }
 0x152   : > { %891 = vst [vmem:[%s1724_s4 + $0xe8] sm:$0xff] %v890_v31  ;;  %v922_v41 = vld [vmem:[%s1606_s24 + $0xf8] sm:$0xff] }
 0x153   : > { %v886_v22 = vld [vmem:[%s1606_s24 + $0x68] sm:$0xff]  ;;  %923 = vst [vmem:[%s1724_s4 + $0x1e8] sm:$0xff] %v922_v41 }
 0x154   : > { %887 = vst [vmem:[%s1724_s4 + $0xc8] sm:$0xff] %v886_v22  ;;  %v918_v56 = vld [vmem:[%s1606_s24 + $0xe8] sm:$0xff] }
 0x155   : > { %919 = vst [vmem:[%s1724_s4 + $0x1c8] sm:$0xff] %v918_v56 }
 0x156 PF: > { %s13_s18 = sadd.s32 1, %s1363_s18   ;;  %s1807_s12 = smov %s1343_s13 }
 0x157   : > { %p10_p11 = scmp.ge.s32.totalorder %s13_s18, 6   ;;  %s1808_s13 = smov %s1442_s27 }
 0x158   : > { %s1809_s14 = smov %s1355_s16  ;;  %s1810_s15 = smov %s1359_s17 }
 0x159   : > { %s1811_s16 = smov %s1814_s19  ;;  %s1812_s17 = smov %s1818_s20 }
 0x15a   :  { %12 = sbr.rel (!%p10_p11) target bundleno = 4 (0x4), region = 103 }

</bundles_post_ra>
